<compile_context>
chip_gen: v6e
topology: v6e:2x2x1
jax: 0.10.0
libtpu: 0.0.40
codegen_flags: <defaults>
</compile_context>

<pallas_src>
import jax
import jax.numpy as jnp
from jax.experimental import pallas as pl
from jax.experimental.pallas import tpu as pltpu


# Double-buffered-input budget, sized against v7x (smallest VMEM of the three
# targets).  v5e/v6e have 128 MiB, but multi-MiB tiles already reach ~85%+ of
# the HBM roofline, so one conservative budget serves all generations.
_INPUT_PIPELINE_BUDGET = 24 * 1024 * 1024


# ----------------------------------------------------------------------------
# Kernels
# ----------------------------------------------------------------------------
def _head_kernel_single(x_ref, w_ref, b_ref, o_ref):
    """Single pass: x_ref (tb, C, HW) NCHW tile, whole spatial extent resident.

    Spatial SUM (XLU cross-lane reduce, spatial on the 128-lane axis), then one
    tiny fused f32 matmul + bias.  No scratch, no pl.when.
    """
    feat = jnp.sum(x_ref[...], axis=-1)                        # (tb, C), f32
    out = jnp.dot(feat, w_ref[...], preferred_element_type=jnp.float32)
    o_ref[...] = (out + b_ref[...]).astype(o_ref.dtype)


def _head_kernel_tiled(x_ref, w_ref, b_ref, o_ref, acc_ref):
    """Fallback when the whole spatial extent does not fit VMEM.

    x_ref: (tb, C, ts).  Spatial grid axis is the reduction (last, "arbitrary");
    acc_ref: (tb, C) f32 pooled-sum accumulator.
    """
    s = pl.program_id(1)

    @pl.when(s == 0)
    def _():
        acc_ref[...] = jnp.zeros_like(acc_ref)

    acc_ref[...] += jnp.sum(x_ref[...], axis=-1)               # (tb, C), f32

    @pl.when(s == pl.num_programs(1) - 1)
    def _():
        out = jnp.dot(acc_ref[...], w_ref[...], preferred_element_type=jnp.float32)
        o_ref[...] = (out + b_ref[...]).astype(o_ref.dtype)


# ----------------------------------------------------------------------------
# Wrappers
# ----------------------------------------------------------------------------
def fuse_head_params(w1, b1, w2, b2, hw):
    """Fuse projection+fc (no nonlinearity between them) and fold in the 1/(H*W)
    global-average-pool scale.  Call ONCE per weight update, not per forward.

    Returns (w_fused, b_fused) padded to a lane-dense output width (mult of 128).
    """
    k = w2.shape[1]
    k_pad = pl.cdiv(k, 128) * 128
    w_fused = (w1 @ w2) * (1.0 / hw)                           # (C, K), f32
    b_fused = b1 @ w2 + b2                                     # (1, K), f32
    w_fused = jnp.pad(w_fused, ((0, 0), (0, k_pad - k)))
    b_fused = jnp.pad(b_fused, ((0, 0), (0, k_pad - k)))
    return w_fused, b_fused


def projection_head_forward(x_nchw, w_fused, b_fused, num_classes):
    """x_nchw: (B, C, H, W) f32.  w_fused: (C, K_pad), b_fused: (1, K_pad) f32.

    Returns logits (B, num_classes) f32.
    """
    B, C, H, W = x_nchw.shape
    HW = H * W
    K_pad = w_fused.shape[1]

    # NCHW kept as-is: (B, C, H, W) -> (B, C, H*W) is a free view, no HBM
    # relayout.  The spatial reduction runs over the lane axis in the kernel.
    x = x_nchw.reshape(B, C, HW)

    # Pad the batch to a multiple of 8 so batch tiles fill the vreg sublanes.
    B_pad = max(8, pl.cdiv(B, 8) * 8)
    if B_pad != B:
        x = jnp.pad(x, ((0, B_pad - B), (0, 0), (0, 0)))

    row_bytes = C * HW * 4                                     # one batch row, f32
    w_bytes = C * K_pad * 4
    b_bytes = K_pad * 4

    if 2 * 8 * row_bytes <= _INPUT_PIPELINE_BUDGET:
        # Whole spatial extent fits: 1-D grid over batch tiles, no reduction
        # axis, no accumulator scratch.
        tb = 8
        # Grow tb for bigger per-step DMAs, but keep >= 2 batch tiles so both
        # v7x TensorCores get work, and stay inside the double-buffer budget.
        while (tb * row_bytes < (2 << 20)
               and B_pad % (tb + 8) == 0
               and B_pad // (tb + 8) >= 2
               and 2 * (tb + 8) * row_bytes <= _INPUT_PIPELINE_BUDGET):
            tb += 8

        vmem_need = (2 * tb * row_bytes + 2 * tb * K_pad * 4
                     + w_bytes + b_bytes + (2 << 20))

        out_padded = pl.pallas_call(
            _head_kernel_single,
            out_shape=jax.ShapeDtypeStruct((B_pad, K_pad), jnp.float32),
            grid_spec=pltpu.PrefetchScalarGridSpec(
                num_scalar_prefetch=0,
                grid=(B_pad // tb,),
                in_specs=[
                    pl.BlockSpec((tb, C, HW), lambda b: (b, 0, 0)),   # input tile
                    pl.BlockSpec((C, K_pad), lambda b: (0, 0)),       # fused weight
                    pl.BlockSpec((1, K_pad), lambda b: (0, 0)),       # fused bias
                ],
                out_specs=pl.BlockSpec((tb, K_pad), lambda b: (b, 0)),
            ),
            compiler_params=pltpu.CompilerParams(
                dimension_semantics=("parallel",),
                vmem_limit_bytes=int(max(vmem_need, 16 << 20)),
            ),
        )(x, w_fused, b_fused)
    else:
        # Spatial extent too large for VMEM: tile the reduction axis (last in
        # the grid, "arbitrary") with an f32 scratch accumulator.
        tb = 8
        ts = max(128, (_INPUT_PIPELINE_BUDGET // (2 * tb * C * 4)) // 128 * 128)
        ts = min(ts, pl.cdiv(HW, 128) * 128)
        HW_pad = pl.cdiv(HW, ts) * ts
        if HW_pad != HW:
            # Zero-pad the spatial axis: zeros do not change the pooled SUM and
            # the 1/(H*W) scale is folded into w_fused with the true H*W.
            x = jnp.pad(x, ((0, 0), (0, 0), (0, HW_pad - HW)))

        vmem_need = (2 * tb * C * ts * 4 + 2 * tb * K_pad * 4
                     + w_bytes + b_bytes + tb * C * 4 + (2 << 20))

        out_padded = pl.pallas_call(
            _head_kernel_tiled,
            out_shape=jax.ShapeDtypeStruct((B_pad, K_pad), jnp.float32),
            grid_spec=pltpu.PrefetchScalarGridSpec(
                num_scalar_prefetch=0,
                grid=(B_pad // tb, HW_pad // ts),
                in_specs=[
                    pl.BlockSpec((tb, C, ts), lambda b, s: (b, 0, s)),
                    pl.BlockSpec((C, K_pad), lambda b, s: (0, 0)),
                    pl.BlockSpec((1, K_pad), lambda b, s: (0, 0)),
                ],
                out_specs=pl.BlockSpec((tb, K_pad), lambda b, s: (b, 0)),
                scratch_shapes=[pltpu.VMEM((tb, C), jnp.float32)],
            ),
            compiler_params=pltpu.CompilerParams(
                dimension_semantics=("parallel", "arbitrary"),
                vmem_limit_bytes=int(max(vmem_need, 16 << 20)),
            ),
        )(x, w_fused, b_fused)

    return out_padded[:B, :num_classes]


def init_linear(key, in_features, out_features):
    """Deterministic PyTorch-style nn.Linear init: U(-1/sqrt(fan_in), 1/sqrt(fan_in)).

    Weight is returned transposed as (in_features, out_features)."""
    kw, kb = jax.random.split(key)
    bound = 1.0 / jnp.sqrt(jnp.float32(in_features))
    w = jax.random.uniform(kw, (in_features, out_features), jnp.float32, -bound, bound)
    b = jax.random.uniform(kb, (1, out_features), jnp.float32, -bound, bound)
    return w, b


if __name__ == "__main__":
    # Small shapes consistent with the module's forward:
    #   batch=16 (two 8-row batch tiles -> both v7x TensorCores get work),
    #   channels(=embedding_dim)=32, spatial=16x16 (HW=256, lane-dense),
    #   projection_dim=64, classes=4.
    B, C, H, W = 16, 32, 16, 16
    PROJ, CLASSES = 64, 4

    key = jax.random.PRNGKey(0)
    kx, k1, k2 = jax.random.split(key, 3)

    x = jax.random.normal(kx, (B, C, H, W), jnp.float32)
    w1, b1 = init_linear(k1, C, PROJ)        # projection: Linear(embedding_dim, projection_dim)
    w2, b2 = init_linear(k2, PROJ, CLASSES)  # fc: Linear(projection_dim, classes)

    # Fused params computed once (per weight update), outside the per-call path.
    w_fused, b_fused = fuse_head_params(w1, b1, w2, b2, H * W)

    out = projection_head_forward(x, w_fused, b_fused, CLASSES)
    out = jax.block_until_ready(out)

    # Pure-JAX reference (un-fused, f32) matching the module's math.
    feat_ref = jnp.mean(x, axis=(2, 3))                        # GAP backbone stand-in
    ref = (feat_ref @ w1 + b1) @ w2 + b2
    assert out.shape == (B, CLASSES)
    err = float(jnp.max(jnp.abs(out - ref)))
    # f32 throughout (fusion changes associativity only) -> tight tolerance.
    assert jnp.allclose(out, ref, atol=1e-3, rtol=1e-3), err

    print("KERNEL_OK")
</pallas_src>

<mosaic_0001>
module attributes {stable_mosaic.version = 11 : i64} {
  func.func @_head_kernel_single(%arg0: i32, %arg1: memref<8x32x256xf32, #tpu.memory_space<vmem>>, %arg2: memref<32x128xf32, #tpu.memory_space<vmem>>, %arg3: memref<1x128xf32, #tpu.memory_space<vmem>>, %arg4: memref<8x128xf32, #tpu.memory_space<vmem>>) attributes {dimension_semantics = [#tpu.dimension_semantics<parallel>], iteration_bounds = array<i64: 2>, scalar_prefetch = 0 : i64, scratch_operands = 0 : i64, tpu.core_type = #tpu.core_type<tc>, window_params = [{transform_indices = @transform_0, window_bounds = array<i64: 8, 32, 256>}, {pipeline_mode = #tpu.pipeline_mode<synchronous>, transform_indices = @transform_1, window_bounds = array<i64: 32, 128>}, {pipeline_mode = #tpu.pipeline_mode<synchronous>, transform_indices = @transform_2, window_bounds = array<i64: 1, 128>}, {transform_indices = @transform_3, window_bounds = array<i64: 8, 128>}]} {
    %c0 = arith.constant 0 : index
    %c0_0 = arith.constant 0 : index
    %c0_1 = arith.constant 0 : index
    %0 = vector.load %arg1[%c0, %c0_0, %c0_1] : memref<8x32x256xf32, #tpu.memory_space<vmem>>, vector<8x32x256xf32>
    %cst = arith.constant dense<0.000000e+00> : vector<8x32xf32>
    %1 = vector.multi_reduction <add>, %0, %cst [2] : vector<8x32x256xf32> to vector<8x32xf32>
    %c0_2 = arith.constant 0 : index
    %c0_3 = arith.constant 0 : index
    %2 = vector.load %arg2[%c0_2, %c0_3] : memref<32x128xf32, #tpu.memory_space<vmem>>, vector<32x128xf32>
    %cst_4 = arith.constant dense<0.000000e+00> : vector<8x128xf32>
    %3 = tpu.matmul %1, %2, %cst_4 {dimension_numbers = #tpu.dot_dimension_numbers<[1], [0], [0], [1], [0, 0, 1, 1], [], []>} : vector<8x32xf32>, vector<32x128xf32>, vector<8x128xf32> -> vector<8x128xf32>
    %c0_5 = arith.constant 0 : index
    %c0_6 = arith.constant 0 : index
    %4 = vector.load %arg3[%c0_5, %c0_6] : memref<1x128xf32, #tpu.memory_space<vmem>>, vector<1x128xf32>
    %5 = vector.broadcast %4 : vector<1x128xf32> to vector<8x128xf32>
    %6 = arith.addf %3, %5 : vector<8x128xf32>
    %c0_7 = arith.constant 0 : index
    %c0_8 = arith.constant 0 : index
    %7 = vector.load %arg4[%c0_7, %c0_8] : memref<8x128xf32, #tpu.memory_space<vmem>>, vector<8x128xf32>
    tpu.vector_store %arg4[%c0_7, %c0_8], %6 {strides = array<i32>} : memref<8x128xf32, #tpu.memory_space<vmem>>, vector<8x128xf32>,
    return
  }
  func.func @transform_0(%arg0: i32) -> (i32, i32, i32) {
    %c0_i32 = arith.constant 0 : i32
    %c0_i32_0 = arith.constant 0 : i32
    %c0_i32_1 = arith.constant 0 : i32
    return %arg0, %c0_i32, %c0_i32_0 : i32, i32, i32
  }
  func.func @transform_1(%arg0: i32) -> (i32, i32) {
    %c0_i32 = arith.constant 0 : i32
    %c0_i32_0 = arith.constant 0 : i32
    %c0_i32_1 = arith.constant 0 : i32
    return %c0_i32, %c0_i32_0 : i32, i32
  }
  func.func @transform_2(%arg0: i32) -> (i32, i32) {
    %c0_i32 = arith.constant 0 : i32
    %c0_i32_0 = arith.constant 0 : i32
    %c0_i32_1 = arith.constant 0 : i32
    return %c0_i32, %c0_i32_0 : i32, i32
  }
  func.func @transform_3(%arg0: i32) -> (i32, i32) {
    %c0_i32 = arith.constant 0 : i32
    %c0_i32_0 = arith.constant 0 : i32
    return %arg0, %c0_i32 : i32, i32
  }
}

</mosaic_0001>

<bundles_post_ra>
// kernel: tpu_custom_call.1
= control target key start
LH: loop header
LB: loop body
LE: loop exit
PB: predicated region body
PF: predicated region fallthrough
CT: control target
= control target key end

     0   :  { %8 = vsyncpa [#allocation3], 0  ;;  %s1343_s0 = inlined_call_operand.hbm [shape: f32[16,32,256], index: 0, kind: input, shape index: {}]   ;;  %s1344_s1 = inlined_call_operand.hbm [shape: f32[32,128], index: 1, kind: input, shape index: {}]   ;;  %s1345_s2 = inlined_call_operand.vmem [shape: f32[1,128], index: 2, kind: input, shape index: {}]   ;;  %s1346_s3 = inlined_call_operand.hbm [shape: f32[16,128], index: 3, kind: output, shape index: {}]  }
   0x1   :  { %10 = vsyncpa [#allocation3 + $0x1], 0 }
   0x2   :  { %11 = vsyncpa [#allocation6], 0 }
   0x3   :  { %12 = vsyncpa [#allocation4], 0 }
   0x4   :  { %14 = vsyncpa [#allocation4 + $0x1], 0  ;;  %s1003_s12 = smov 0   ;;  %s1005_s13 = smov 0  }
   0x5   :  { %s1007_s14 = smov 0   ;;  %s1009_s15 = smov 0  }
   0x6 LB: > { %s1024_s16 = sadd.s32 4294967295, %s972_s15   ;;  %s751_s17 = sadd.s32 4294967294, %s972_s15   ;;  %s972_s15 = sphi %s1009_s15, %s1368_s15   ;;  %s968_s14 = sphi %s1007_s14, %s1367_s14   ;;  %s964_s13 = sphi %s1005_s13, %s1366_s13   ;;  %s960_s12 = sphi %s1003_s12, %s1365_s12  }
   0x7   : > { %p40_p0 = scmp.ne.s32.totalorder %s964_s13, %s960_s12  ;;  %p1347_p1 = scmp.eq.s32.totalorder %s1024_s16, 0 }
   0x8   : > { %p112_p3 = scmp.eq.s32.totalorder %s751_s17, 1  ;;  %p752_p5 = scmp.ge.s32.totalorder %s972_s15, 1 }
   0x9   : > { %p1033_p4 = por %p1347_p1, %p40_p0  ;;  %p119_p7 = scmp.lt.s32.totalorder %s972_s15, 3 }
   0xa   : > { %p1038_p6 = por %p112_p3, %p40_p0  ;;  %s974_s21 = smov [#allocation5]  }
   0xb   : > { %s1351_s18 = scalar_select %p1033_p4, 1, 0 }
   0xc   : > { %s1352_s19 = scalar_select %p1038_p6, 1, 0 }
   0xd   : > { %p1043_p8 = pnand %p752_p5, %p119_p7  ;;  %s131_s22 = sshll.u32 %s974_s21, 4  ;;  %s132_s22 = int_to_ptr.vmem [resolvable:$true] %s131_s22 }
   0xe   : > { %s1057_s24 = sadd.s32 1, %s972_s15   ;;  %s27_s25 = sadd.s32 1, %s968_s14 }
   0xf   : > { %s1353_s20 = scalar_select %p1043_p8, 1, 0 }
  0x10   : > { %p795_p9 = pneg %p1043_p8  ;;  %s24_s26 = ssub.s32 %s972_s15, %s1057_s24 }
  0x11   : > { %s861_s27 = scalar_lea.vmem %s132_s22, 512  ;;  %p869_p5 = scmp.lt.s32.totalorder %s132_s22, %s132_s22 }
  0x12   : > { %p1052_p11 = pnand %p795_p9, %p1347_p1  ;;  %p862_p13 = scmp.ne.s32.totalorder %s132_s22, %s861_s27 }
  0x13   : > { %p870_p7 = scmp.lt.s32.totalorder %s861_s27, %s861_s27 }
  0x14   : > { %p852_p12 = pneg %p1052_p11 }
  0x15   : > { %p871_p10 = por %p870_p7, %p869_p5 }
  0x16   : > { %p864_p0 = pnand %p862_p13, %p852_p12 }
  0x18   : > { %p865_p3 = pneg %p864_p0 }
  0x1a   : > { %p872_p2 = pnand %p871_p10, %p865_p3 }
  0x1c   : > { %875 = shalt.err (!%p872_p2)
}
  0x1d   : > { %s975_s28 = smov 128   ;;  %s976_s29 = smov 8  }
  0x1e   : > { %798 = dma.hbm_to_vmem [thread:$0]  (!%p1052_p11), %s1344_s1, 512, %s132_s22, [#allocation6], %s975_s28, %s975_s28, %s976_s29  }
  0x1f   : > { %p25_p9 = scmp.eq.s32.totalorder %s24_s26, 0  ;;  %p34_p12 = scmp.ne.s32.totalorder %s968_s14, %s964_s13 }
  0x20   : > { %p35_p10 = scmp.eq.s32.totalorder %s972_s15, 0  ;;  %p808_p2 = scmp.lt.s32.totalorder %s972_s15, 2 }
  0x21   : > { %s1074_s5 = scalar_select %p25_p9, %s968_s14, %s27_s25  }
  0x22   : > { %p36_p13 = por %p35_p10, %p34_p12  ;;  %p1355_p0 = scmp.eq.s32.totalorder %s1024_s16, 1 }
  0x23   : > { %s148_s7 = sand.u32 1, %s968_s14   ;;  %s770_s8 = sshll.u32 %s972_s15, 13 }
  0x24   : > { %p1078_p3 = por %p1355_p0, %p34_p12  ;;  %s755_s9 = sshll.u32 %s148_s7, 9 }
  0x25   : > { %s1087_s17 = scalar_lea.hbm %s1343_s0, %s770_s8  ;;  %s152_s21 = scalar_lea.vmem [#allocation2], %s755_s9 }
  0x26   : > { %s1356_s6 = scalar_select %p1078_p3, 1, 0 }
  0x27   : > { %s160_s22 = sshll.u32 %s152_s21, 4  ;;  %p1089_p11 = pnand %p808_p2, %p36_p13  ;;  %s1093_s22 = int_to_ptr.vmem [resolvable:$true] %s160_s22 }
  0x28   : > { %s1095_s25 = scalar_lea.sflag [#allocation3], %s148_s7  ;;  %s876_s26 = scalar_lea.hbm %s1087_s17, 8192 }
  0x29   : > { %p877_p5 = scmp.ne.s32.totalorder %s1087_s17, %s876_s26  ;;  %p878_p7 = pneg %p1089_p11 }
  0x2a   : > { %s881_s29 = scalar_lea.hbm %s1343_s0, 16384  ;;  %p882_p10 = scmp.lt.s32.totalorder %s1087_s17, %s1343_s0 }
  0x2b   : > { %p879_p9 = pnand %p878_p7, %p877_p5  ;;  %p883_p2 = scmp.lt.s32.totalorder %s881_s29, %s876_s26 }
  0x2d   : > { %p880_p12 = pneg %p879_p9  ;;  %p884_p13 = por %p883_p2, %p882_p10 }
  0x2f   : > { %p885_p0 = pnand %p884_p13, %p880_p12 }
  0x31   : > { %888 = shalt.err (!%p885_p0)
}
  0x32   : > { %s889_s7 = scalar_lea.vmem %s1093_s22, 8192  ;;  %s977_s8 = smov [#allocation2]  }
  0x33   : > { %p890_p1 = scmp.ne.s32.totalorder %s1093_s22, %s889_s7  ;;  %s894_s9 = sshll.u32 %s977_s8, 4  ;;  %s895_s9 = int_to_ptr.vmem [resolvable:$false] %s894_s9 }
  0x34   : > { %s896_s10 = scalar_lea.vmem %s895_s9, 16384  ;;  %p897_p9 = scmp.lt.s32.totalorder %s1093_s22, %s895_s9 }
  0x35   : > { %p892_p6 = pnand %p890_p1, %p878_p7  ;;  %p898_p3 = scmp.lt.s32.totalorder %s896_s10, %s889_s7 }
  0x37   : > { %p893_p5 = pneg %p892_p6  ;;  %p899_p4 = por %p898_p3, %p897_p9 }
  0x39   : > { %p900_p8 = pnand %p899_p4, %p893_p5 }
  0x3b   : > { %903 = shalt.err (!%p900_p8)
}
  0x3c   : > { %s978_s11 = smov 256   ;;  %s979_s21 = smov 16  }
  0x3d   : > { %802 = dma.hbm_to_vmem [thread:$0]  (!%p1089_p11), %s1087_s17, 8192, %s1093_s22, %s1095_s25, %s978_s11, %s978_s11, %s979_s21  }
  0x3e   : > { %p1358_p1 = scmp.ne.s32.totalorder %s1353_s20, 0 }
  0x3f   : > { %s1119_s26 = sand.u32 (!%p1358_p1), 1, %s964_s13   ;;  %p1359_p4 = scmp.ne.s32.totalorder (!%p1358_p1), %s1351_s18, 0 }
  0x40   : > { %172 = sbr.rel (%p1358_p1) target bundleno = 488 (0x1e8), region = 32  ;;  %s760_s27 = sshll.u32 (!%p1358_p1), %s1119_s26, 9 }
  0x41   : > { %s175_s28 = scalar_lea.sflag (!%p1358_p1), [#allocation3], %s1119_s26  ;;  %s1123_s29 = scalar_lea.vmem (!%p1358_p1), [#allocation2], %s760_s27 }
  0x45   : > { %947 = dma.done.wait (%p1359_p4), %s175_s28, 8192  }
  0x46   : > { %949 = vsyncadd (%p1359_p4), %s175_s28, 4294959104  ;;  %p1360_p6 = scmp.eq.s32.totalorder %s1024_s16, 0 }
  0x48   : > { %951 = dma.done.wait (%p1360_p6), [#allocation6], 512   ;;  %p1361_p8 = pmov %p1360_p6 }
  0x49   : > { %v214_v0 = vld [vmem:[%s1123_s29 + $0x40] sm:$0xff]  ;;  %v215_v1 = vld [vmem:[%s1123_s29 + $0x48] sm:$0xff]  ;;  %v216_v5 = vld [vmem:[%s1123_s29 + $0x50] sm:$0xff]  ;;  %vm981_vm0 = vmmov 0   ;;  %vm420_vm1 = vcmask 130112   ;;  %vm427_vm2 = vcmask 195712  }
  0x4a   : > { %953 = vsyncadd (%p1361_p8), [#allocation6], 4294966784  ;;  %v206_v2 = vld [vmem:[%s1123_s29] sm:$0xff]  ;;  %v282_v3 = vadd.f32 %v215_v1, %v214_v0  ;;  %v207_v4 = vld [vmem:[%s1123_s29 + $0x8] sm:$0xff]  ;;  %vm434_vm3 = vcmask 261312   ;;  %vm569_vm4 = vcmask 1041409  }
  0x4b   : > { %v217_v6 = vld [vmem:[%s1123_s29 + $0x58] sm:$0xff]  ;;  %v270_v7 = vadd.f32 %v207_v4, %v206_v2  ;;  %v208_v8 = vld [vmem:[%s1123_s29 + $0x10] sm:$0xff]  ;;  %v218_v12 = vld [vmem:[%s1123_s29 + $0x60] sm:$0xff]  ;;  %vm571_vm5 = vcmask 1042434   ;;  %vm573_vm6 = vcmask 1043459   ;;  %vm575_vm7 = vcmask 1044484  }
  0x4c   : > { %v209_v9 = vld [vmem:[%s1123_s29 + $0x18] sm:$0xff]  ;;  %283 = vadd.xlane.f32.xlu1 %v282_v3  ;;  %v285_v10 = vadd.f32 %v217_v6, %v216_v5  ;;  %v219_v13 = vld [vmem:[%s1123_s29 + $0x68] sm:$0xff]  ;;  %v210_v14 = vld [vmem:[%s1123_s29 + $0x20] sm:$0xff]  ;;  %vm577_vm8 = vcmask 1045509   ;;  %vm579_vm9 = vcmask 1046534   ;;  %vm581_vm10 = vcmask 1047559  }
  0x4d   : > { %271 = vadd.xlane.f32.xlu0 %v270_v7  ;;  %v273_v11 = vadd.f32 %v209_v9, %v208_v8  ;;  %v211_v15 = vld [vmem:[%s1123_s29 + $0x28] sm:$0xff]  ;;  %v288_v16 = vadd.f32 %v219_v13, %v218_v12  ;;  %v224_v18 = vld [vmem:[%s1123_s29 + $0x90] sm:$0xff]  ;;  %v225_v19 = vld [vmem:[%s1123_s29 + $0x98] sm:$0xff]  ;;  %vm583_vm11 = vcmask 261120   ;;  %s762_s18 = sshll.u32 %s1119_s26, 3  ;;  %s766_s22 = sshll.u32 %s1024_s16, 7 }
  0x4e   : > { %v276_v17 = vadd.f32 %v211_v15, %v210_v14  ;;  %v222_v20 = vld [vmem:[%s1123_s29 + $0x80] sm:$0xff]  ;;  %v223_v21 = vld [vmem:[%s1123_s29 + $0x88] sm:$0xff]  ;;  %v297_v22 = vadd.f32 %v225_v19, %v224_v18  ;;  %v220_v24 = vld [vmem:[%s1123_s29 + $0x70] sm:$0xff]  ;;  %s204_s23 = scalar_lea.vmem [#allocation7], %s762_s18  ;;  %s1306_s7 = scalar_lea.hbm %s1346_s3, %s766_s22 }
  0x4f   : > { %v294_v23 = vadd.f32 %v223_v21, %v222_v20  ;;  %v221_v25 = vld [vmem:[%s1123_s29 + $0x78] sm:$0xff]  ;;  %v212_v26 = vld [vmem:[%s1123_s29 + $0x30] sm:$0xff]  ;;  %v230_v30 = vld [vmem:[%s1123_s29 + $0xc0] sm:$0xff]  ;;  %s671_s25 = sshll.u32 %s204_s23, 4  ;;  %s658_s8 = scalar_lea.sflag [#allocation4], %s1119_s26  ;;  %s672_s25 = int_to_ptr.vmem [resolvable:$true] %s671_s25 }
  0x50   : > { %286 = vadd.xlane.f32.xlu1 %v285_v10  ;;  %v213_v27 = vld [vmem:[%s1123_s29 + $0x38] sm:$0xff]  ;;  %v291_v28 = vadd.f32 %v221_v25, %v220_v24  ;;  %v231_v31 = vld [vmem:[%s1123_s29 + $0xc8] sm:$0xff]  ;;  %v226_v32 = vld [vmem:[%s1123_s29 + $0xa0] sm:$0xff]  ;;  %s904_s9 = scalar_lea.vmem %s672_s25, 128  ;;  %p1362_p11 = scmp.ne.s32.totalorder %s1356_s6, 0 }
  0x51   : > { %274 = vadd.xlane.f32.xlu0 %v273_v11  ;;  %v279_v29 = vadd.f32 %v213_v27, %v212_v26  ;;  %v227_v33 = vld [vmem:[%s1123_s29 + $0xa8] sm:$0xff]  ;;  %v306_v34 = vadd.f32 %v231_v31, %v230_v30  ;;  %v228_v36 = vld [vmem:[%s1123_s29 + $0xb0] sm:$0xff]  ;;  %v229_v37 = vld [vmem:[%s1123_s29 + $0xb8] sm:$0xff]  ;;  %p905_p3 = scmp.ne.s32.totalorder %s672_s25, %s904_s9  ;;  %s982_s10 = smov [#allocation7]  }
  0x52   : > { %v300_v35 = vadd.f32 %v227_v33, %v226_v32  ;;  %v232_v38 = vld [vmem:[%s1123_s29 + $0xd0] sm:$0xff]  ;;  %v233_v39 = vld [vmem:[%s1123_s29 + $0xd8] sm:$0xff]  ;;  %v303_v40 = vadd.f32 %v229_v37, %v228_v36  ;;  %v238_v42 = vld [vmem:[%s1123_s29 + $0x100] sm:$0xff]  ;;  %v980_v32 = vmov 0.0   ;;  %s908_s16 = sshll.u32 %s982_s10, 4  ;;  %s909_s16 = int_to_ptr.vmem [resolvable:$false] %s908_s16 }
  0x53   : > { %v309_v41 = vadd.f32 %v233_v39, %v232_v38  ;;  %v239_v43 = vld [vmem:[%s1123_s29 + $0x108] sm:$0xff]  ;;  %v234_v44 = vld [vmem:[%s1123_s29 + $0xe0] sm:$0xff]  ;;  %v236_v48 = vld [vmem:[%s1123_s29 + $0xf0] sm:$0xff]  ;;  %776 = vmatprep.subr.mxu0 %v980_v32  ;;  %784 = vmatprep.mubr.msk.f32.mxu0 %vm981_vm0, %v980_v32  ;;  %p906_p7 = pnand %p905_p3, %p1362_p11  ;;  %s910_s11 = scalar_lea.vmem %s909_s16, 256 }
  0x54   : > { %289 = vadd.xlane.f32.xlu1 %v288_v16  ;;  %v235_v45 = vld [vmem:[%s1123_s29 + $0xe8] sm:$0xff]  ;;  %v318_v46 = vadd.f32 %v239_v43, %v238_v42  ;;  %v237_v49 = vld [vmem:[%s1123_s29 + $0xf8] sm:$0xff]  ;;  %v240_v50 = vld [vmem:[%s1123_s29 + $0x110] sm:$0xff]  ;;  %p911_p10 = scmp.lt.s32.totalorder %s672_s25, %s909_s16  ;;  %p912_p2 = scmp.lt.s32.totalorder %s910_s11, %s904_s9 }
  0x55   : > { %277 = vadd.xlane.f32.xlu0 %v276_v17  ;;  %v312_v47 = vadd.f32 %v235_v45, %v234_v44  ;;  %v241_v51 = vld [vmem:[%s1123_s29 + $0x118] sm:$0xff]  ;;  %v315_v52 = vadd.f32 %v237_v49, %v236_v48  ;;  %v246_v54 = vld [vmem:[%s1123_s29 + $0x140] sm:$0xff]  ;;  %v247_v55 = vld [vmem:[%s1123_s29 + $0x148] sm:$0xff]  ;;  %p907_p12 = pneg %p906_p7 }
  0x56   : > { %v321_v53 = vadd.f32 %v241_v51, %v240_v50  ;;  %v242_v56 = vld [vmem:[%s1123_s29 + $0x120] sm:$0xff]  ;;  %v243_v57 = vld [vmem:[%s1123_s29 + $0x128] sm:$0xff]  ;;  %v330_v58 = vadd.f32 %v247_v55, %v246_v54  ;;  %v244_v60 = vld [vmem:[%s1123_s29 + $0x130] sm:$0xff]  ;;  %p913_p13 = por %p912_p2, %p911_p10 }
  0x57   : > { %v324_v59 = vadd.f32 %v243_v57, %v242_v56  ;;  %v245_v61 = vld [vmem:[%s1123_s29 + $0x138] sm:$0xff]  ;;  %v248_v62 = vld [vmem:[%s1123_s29 + $0x150] sm:$0xff]  ;;  %v254_v2 = vld [vmem:[%s1123_s29 + $0x180] sm:$0xff] }
  0x58   : > { %298 = vadd.xlane.f32.xlu1 %v297_v22  ;;  %v249_v63 = vld [vmem:[%s1123_s29 + $0x158] sm:$0xff]  ;;  %v327_v0 = vadd.f32 %v245_v61, %v244_v60  ;;  %v255_v3 = vld [vmem:[%s1123_s29 + $0x188] sm:$0xff]  ;;  %v250_v4 = vld [vmem:[%s1123_s29 + $0x160] sm:$0xff]  ;;  %p914_p0 = pnand %p913_p13, %p907_p12 }
  0x59   : > { %295 = vadd.xlane.f32.xlu0 %v294_v23  ;;  %v333_v1 = vadd.f32 %v249_v63, %v248_v62  ;;  %v251_v5 = vld [vmem:[%s1123_s29 + $0x168] sm:$0xff]  ;;  %v342_v6 = vadd.f32 %v255_v3, %v254_v2  ;;  %v252_v8 = vld [vmem:[%s1123_s29 + $0x170] sm:$0xff]  ;;  %v253_v9 = vld [vmem:[%s1123_s29 + $0x178] sm:$0xff] }
  0x5a   : > { %v336_v7 = vadd.f32 %v251_v5, %v250_v4  ;;  %v256_v10 = vld [vmem:[%s1123_s29 + $0x190] sm:$0xff]  ;;  %v257_v11 = vld [vmem:[%s1123_s29 + $0x198] sm:$0xff]  ;;  %v339_v12 = vadd.f32 %v253_v9, %v252_v8  ;;  %v262_v14 = vld [vmem:[%s1123_s29 + $0x1c0] sm:$0xff] }
  0x5b   : > { %v345_v13 = vadd.f32 %v257_v11, %v256_v10  ;;  %v263_v15 = vld [vmem:[%s1123_s29 + $0x1c8] sm:$0xff]  ;;  %v258_v16 = vld [vmem:[%s1123_s29 + $0x1a0] sm:$0xff]  ;;  %v260_v20 = vld [vmem:[%s1123_s29 + $0x1b0] sm:$0xff] }
  0x5c   : > { %292 = vadd.xlane.f32.xlu1 %v291_v28  ;;  %v259_v17 = vld [vmem:[%s1123_s29 + $0x1a8] sm:$0xff]  ;;  %v354_v18 = vadd.f32 %v263_v15, %v262_v14  ;;  %v261_v21 = vld [vmem:[%s1123_s29 + $0x1b8] sm:$0xff]  ;;  %v264_v22 = vld [vmem:[%s1123_s29 + $0x1d0] sm:$0xff] }
  0x5d   : > { %280 = vadd.xlane.f32.xlu0 %v279_v29  ;;  %v348_v19 = vadd.f32 %v259_v17, %v258_v16  ;;  %v265_v23 = vld [vmem:[%s1123_s29 + $0x1d8] sm:$0xff]  ;;  %v351_v24 = vadd.f32 %v261_v21, %v260_v20  ;;  %v268_v26 = vld [vmem:[%s1123_s29 + $0x1f0] sm:$0xff]  ;;  %v266_v28 = vld [vmem:[%s1123_s29 + $0x1e0] sm:$0xff] }
  0x5e   : > { %v357_v25 = vadd.f32 %v265_v23, %v264_v22  ;;  %v269_v27 = vld [vmem:[%s1123_s29 + $0x1f8] sm:$0xff]  ;;  %v267_v29 = vld [vmem:[%s1123_s29 + $0x1e8] sm:$0xff]  ;;  %v366_v36 = vld [vmem:[#allocation5] sm:$0xff] }
  0x5f   : > { %v363_v30 = vadd.f32 %v269_v27, %v268_v26  ;;  %v360_v31 = vadd.f32 %v267_v29, %v266_v28  ;;  %v369_v33 = vld [vmem:[#allocation5 + $0x18] sm:$0xff] }
  0x60   : > { %307 = vadd.xlane.f32.xlu1 %v306_v34  ;;  %777 = vmatpush3.msra.mxu0 %v369_v33  ;;  %v368_v34 = vld [vmem:[#allocation5 + $0x10] sm:$0xff] }
  0x61   : > { %301 = vadd.xlane.f32.xlu0 %v300_v35  ;;  %778 = vmatprep.subr.mxu0 %v980_v32  ;;  %v367_v35 = vld [vmem:[#allocation5 + $0x8] sm:$0xff] }
  0x62   : > { %779 = vmatpush3.msra.mxu0 %v368_v34 }
  0x63   : > { %780 = vmatprep.subr.mxu0 %v980_v32 }
  0x64   : > { %304 = vadd.xlane.f32.xlu1 %v303_v40  ;;  %781 = vmatpush3.msra.mxu0 %v367_v35 }
  0x65   : > { %310 = vadd.xlane.f32.xlu0 %v309_v41  ;;  %782 = vmatprep.subr.mxu0 %v980_v32 }
  0x66   : > { %783 = vmatpush3.msra.mxu0 %v366_v36 }
  0x68   : > { %319 = vadd.xlane.f32.xlu1 %v318_v46 }
  0x69   : > { %313 = vadd.xlane.f32.xlu0 %v312_v47 }
  0x6c   : > { %316 = vadd.xlane.f32.xlu1 %v315_v52 }
  0x6d   : > { %322 = vadd.xlane.f32.xlu0 %v321_v53  ;;  %v409_v53 = vlaneseq }
  0x6f   : > { %v410_v56 = vand.u32 127, %v409_v53  ;;  %v412_v61 = vshrl.u32 %v409_v53, 7 }
  0x70   : > { %331 = vadd.xlane.f32.xlu1 %v330_v58 }
  0x71   : > { %325 = vadd.xlane.f32.xlu0 %v324_v59  ;;  %v415_v57 = vadd.s32 4294967288, %v410_v56  ;;  %v422_v59 = vadd.s32 4294967280, %v410_v56  ;;  %v429_v62 = vadd.s32 4294967272, %v410_v56  ;;  %v1221_v3 = vsub.s32 %v410_v56, %v412_v61 }
  0x73   : > { %v1213_v63 = vsub.s32 %v415_v57, %v412_v61  ;;  %v1223_v4 = vsub.s32 %v429_v62, %v412_v61 }
  0x74   : > { %328 = vadd.xlane.f32.xlu1 %v327_v0 }
  0x75   : > { %334 = vadd.xlane.f32.xlu0 %v333_v1  ;;  %v1217_v1 = vsub.s32 %v422_v59, %v412_v61 }
  0x78   : > { %343 = vadd.xlane.f32.xlu1 %v342_v6 }
  0x79   : > { %337 = vadd.xlane.f32.xlu0 %v336_v7 }
  0x7c   : > { %340 = vadd.xlane.f32.xlu1 %v339_v12 }
  0x7d   : > { %346 = vadd.xlane.f32.xlu0 %v345_v13 }
  0x80   : > { %355 = vadd.xlane.f32.xlu1 %v354_v18 }
  0x81   : > { %349 = vadd.xlane.f32.xlu0 %v348_v19 }
  0x84   : > { %352 = vadd.xlane.f32.xlu1 %v351_v24 }
  0x85   : > { %358 = vadd.xlane.f32.xlu0 %v357_v25 }
  0x88   : > { %364 = vadd.xlane.f32.xlu1 %v363_v30 }
  0x89   : > { %361 = vadd.xlane.f32.xlu0 %v360_v31 }
  0xd5   : > { %v284_v37 = vpop.xlane.xlu1 %283 }
  0xd6   : > { %v272_v38 = vpop.xlane.xlu0 %271  ;;  %v439_v11 = vrot.slane %v284_v37, %v1221_v3 }
  0xd7   : > { %v414_v12 = vrot.slane %v272_v38, %v1221_v3 }
  0xd9   : > { %v287_v39 = vpop.xlane.xlu1 %286 }
  0xda   : > { %v275_v40 = vpop.xlane.xlu0 %274  ;;  %v443_v5 = vrot.slane %v287_v39, %v1213_v63 }
  0xdb   : > { %v419_v6 = vrot.slane %v275_v40, %v1213_v63 }
  0xdc   : > { %v444_v15 = vsel %vm420_vm1, %v443_v5, %v439_v11 }
  0xdd   : > { %v290_v41 = vpop.xlane.xlu1 %289  ;;  %v421_v16 = vsel %vm420_vm1, %v419_v6, %v414_v12 }
  0xde   : > { %v278_v42 = vpop.xlane.xlu0 %277  ;;  %v448_v8 = vrot.slane %v290_v41, %v1217_v1 }
  0xdf   : > { %v426_v9 = vrot.slane %v278_v42, %v1217_v1 }
  0xe0   : > { %v449_v18 = vsel %vm427_vm2, %v448_v8, %v444_v15 }
  0xe1   : > { %v299_v43 = vpop.xlane.xlu1 %298  ;;  %v428_v19 = vsel %vm427_vm2, %v426_v9, %v421_v16 }
  0xe2   : > { %v296_v44 = vpop.xlane.xlu0 %295  ;;  %v462_v20 = vrot.slane %v299_v43, %v1213_v63 }
  0xe3   : > { %v458_v21 = vrot.slane %v296_v44, %v1221_v3 }
  0xe5   : > { %v293_v45 = vpop.xlane.xlu1 %292  ;;  %v463_v28 = vsel %vm420_vm1, %v462_v20, %v458_v21 }
  0xe6   : > { %v281_v46 = vpop.xlane.xlu0 %280  ;;  %v453_v13 = vrot.slane %v293_v45, %v1223_v4 }
  0xe7   : > { %v433_v14 = vrot.slane %v281_v46, %v1223_v4 }
  0xe8   : > { %v454_v23 = vsel %vm434_vm3, %v453_v13, %v449_v18 }
  0xe9   : > { %v1197_v47 = vpop.xlane.xlu1 %307  ;;  %v435_v24 = vsel %vm434_vm3, %v433_v14, %v428_v19 }
  0xea   : > { %v302_v48 = vpop.xlane.xlu0 %301  ;;  %v570_v29 = vsel %vm569_vm4, %v454_v23, %v435_v24  ;;  %v477_v32 = vrot.slane %v1197_v47, %v1221_v3 }
  0xeb   : > { %v467_v25 = vrot.slane %v302_v48, %v1217_v1 }
  0xed   : > { %v305_v49 = vpop.xlane.xlu1 %304  ;;  %v468_v33 = vsel %vm427_vm2, %v467_v25, %v463_v28 }
  0xee   : > { %v1199_v50 = vpop.xlane.xlu0 %310  ;;  %v472_v26 = vrot.slane %v305_v49, %v1223_v4 }
  0xef   : > { %v481_v30 = vrot.slane %v1199_v50, %v1213_v63 }
  0xf0   : > { %v473_v36 = vsel %vm434_vm3, %v472_v26, %v468_v33 }
  0xf1   : > { %v1201_v51 = vpop.xlane.xlu1 %319  ;;  %v482_v45 = vsel %vm420_vm1, %v481_v30, %v477_v32 }
  0xf2   : > { %v1203_v52 = vpop.xlane.xlu0 %313  ;;  %v496_v40 = vrot.slane %v1201_v51, %v1221_v3 }
  0xf3   : > { %v486_v34 = vrot.slane %v1203_v52, %v1217_v1 }
  0xf5   : > { %v1205_v54 = vpop.xlane.xlu1 %316  ;;  %v487_v50 = vsel %vm427_vm2, %v486_v34, %v482_v45 }
  0xf6   : > { %v1207_v55 = vpop.xlane.xlu0 %322  ;;  %v491_v37 = vrot.slane %v1205_v54, %v1223_v4 }
  0xf7   : > { %v500_v35 = vrot.slane %v1207_v55, %v1213_v63 }
  0xf8   : > { %v492_v54 = vsel %vm434_vm3, %v491_v37, %v487_v50 }
  0xf9   : > { %v1209_v58 = vpop.xlane.xlu1 %331  ;;  %v501_v51 = vsel %vm420_vm1, %v500_v35, %v496_v40 }
  0xfa   : > { %v1211_v60 = vpop.xlane.xlu0 %325  ;;  %v515_v46 = vrot.slane %v1209_v58, %v1221_v3  ;;  %v572_v58 = vsel %vm571_vm5, %v473_v36, %v570_v29 }
  0xfb   : > { %v505_v38 = vrot.slane %v1211_v60, %v1217_v1 }
  0xfd   : > { %v1215_v0 = vpop.xlane.xlu1 %328  ;;  %v506_v55 = vsel %vm427_vm2, %v505_v38, %v501_v51 }
  0xfe   : > { %v1219_v2 = vpop.xlane.xlu0 %334  ;;  %v510_v41 = vrot.slane %v1215_v0, %v1223_v4 }
  0xff   : > { %v519_v39 = vrot.slane %v1219_v2, %v1213_v63 }
 0x100   : > { %v511_v59 = vsel %vm434_vm3, %v510_v41, %v506_v55 }
 0x101   : > { %v1227_v7 = vpop.xlane.xlu1 %343  ;;  %v520_v56 = vsel %vm420_vm1, %v519_v39, %v515_v46 }
 0x102   : > { %v338_v10 = vpop.xlane.xlu0 %337  ;;  %v534_v52 = vrot.slane %v1227_v7, %v1221_v3 }
 0x103   : > { %v524_v42 = vrot.slane %v338_v10, %v1217_v1 }
 0x105   : > { %v341_v17 = vpop.xlane.xlu1 %340  ;;  %v525_v60 = vsel %vm427_vm2, %v524_v42, %v520_v56 }
 0x106   : > { %v347_v22 = vpop.xlane.xlu0 %346  ;;  %v529_v47 = vrot.slane %v341_v17, %v1223_v4 }
 0x107   : > { %v538_v43 = vrot.slane %v347_v22, %v1213_v63 }
 0x108   : > { %v530_v0 = vsel %vm434_vm3, %v529_v47, %v525_v60 }
 0x109   : > { %v356_v27 = vpop.xlane.xlu1 %355  ;;  %v539_v61 = vsel %vm420_vm1, %v538_v43, %v534_v52 }
 0x10a   : > { %v350_v31 = vpop.xlane.xlu0 %349  ;;  %v553_v2 = vrot.slane %v356_v27, %v1221_v3 }
 0x10b   : > { %v543_v48 = vrot.slane %v350_v31, %v1217_v1 }
 0x10d   : > { %v353_v44 = vpop.xlane.xlu1 %352  ;;  %v544_v5 = vsel %vm427_vm2, %v543_v48, %v539_v61 }
 0x10e   : > { %v359_v49 = vpop.xlane.xlu0 %358  ;;  %v548_v53 = vrot.slane %v353_v44, %v1223_v4 }
 0x10f   : > { %v557_v57 = vrot.slane %v359_v49, %v1213_v63  ;;  %v574_v63 = vsel %vm573_vm6, %v492_v54, %v572_v58 }
 0x110   : > { %v549_v8 = vsel %vm434_vm3, %v548_v53, %v544_v5  ;;  %v576_v10 = vsel %vm575_vm7, %v511_v59, %v574_v63 }
 0x111   : > { %v365_v62 = vpop.xlane.xlu1 %364  ;;  %v558_v11 = vsel %vm420_vm1, %v557_v57, %v553_v2  ;;  %v578_v3 = vsel %vm577_vm8, %v530_v0, %v576_v10 }
 0x112   : > { %v362_v6 = vpop.xlane.xlu0 %361  ;;  %v567_v7 = vrot.slane %v365_v62, %v1223_v4  ;;  %v580_v13 = vsel %vm579_vm9, %v549_v8, %v578_v3 }
 0x113   : > { %v562_v9 = vrot.slane %v362_v6, %v1217_v1  ;;  %v763_v1 = vld [vmem:[%s1345_s2] ss:$0 sm:$0xff] }
 0x115   : > { %v563_v12 = vsel %vm427_vm2, %v562_v9, %v558_v11 }
 0x116   : > { %v568_v4 = vsel %vm434_vm3, %v567_v7, %v563_v12 }
 0x117   : > { %v582_v14 = vsel %vm581_vm10, %v568_v4, %v580_v13 }
 0x118   : > { %785 = vmatmul.mubr.msk.f32.vlgmr.msra.gmra.mxu0 %vm583_vm11, %v582_v14 }
 0x1d8   : > { %v652_v15 = vpop.f32.mrf.mxu0 }
 0x1d9   : > { %v653_v16 = vadd.f32 %v763_v1, %v652_v15 }
 0x1da   : > { %v786_v17 = vpop.f32.mrf.mxu0 }
 0x1db   : > { %656 = vst [vmem:[%s204_s23] sm:$0xff] %v653_v16 }
 0x1dc   : > { %917 = shalt.err (!%p914_p0)
}
 0x1dd   : > { %s918_s21 = scalar_lea.hbm %s1306_s7, 128  ;;  %s922_s28 = scalar_lea.hbm %s1346_s3, 256 }
 0x1de   : > { %p919_p5 = scmp.ne.s32.totalorder %s1306_s7, %s918_s21  ;;  %p923_p4 = scmp.lt.s32.totalorder %s1306_s7, %s1346_s3 }
 0x1df   : > { %p924_p6 = scmp.lt.s32.totalorder %s922_s28, %s918_s21 }
 0x1e0   : > { %p920_p9 = pnand %p919_p5, %p1362_p11 }
 0x1e1   : > { %p925_p8 = por %p924_p6, %p923_p4 }
 0x1e2   : > { %p921_p1 = pneg %p920_p9 }
 0x1e4   : > { %p926_p3 = pnand %p925_p8, %p921_p1 }
 0x1e6   : > { %929 = shalt.err (!%p926_p3)
}
 0x1e7   : > { %793 = dma.vmem_to_hbm [thread:$0]  (%p1362_p11), %s672_s25, 128, %s1306_s7, %s658_s8  }
 0x1e8 PF: > { %s683_s20 = sand.u32 1, %s960_s12   ;;  %p1363_p7 = scmp.ne.s32.totalorder %s1352_s19, 0 }
 0x1e9   : > { %p1364_p12 = scmp.ge.s32.totalorder %s972_s15, 2  ;;  %s684_s17 = scalar_lea.sflag [#allocation4], %s683_s20 }
 0x1eb   : > { %p804_p10 = pnand %p1364_p12, %p1363_p7 }
 0x1ed   : > { %p805_p2 = pneg %p804_p10 }
 0x1ef   : > { %955 = dma.done.wait (%p805_p2), %s684_s17, 128  }
 0x1f0   : > { %957 = vsyncadd (%p805_p2), %s684_s17, 4294967168  ;;  %p17_p13 = scmp.ge.s32.totalorder %s1057_s24, 4   ;;  %s1365_s12 = smov %s964_s13 }
 0x1f1   : > { %s1366_s13 = smov %s968_s14  ;;  %s1367_s14 = smov %s1074_s5 }
 0x1f2   : > { %s1368_s15 = smov %s1057_s24  ;;  %19 = sbr.rel (!%p17_p13) target bundleno = 6 (0x6), region = 81 }
 0x1f7   :  { %689 = vsyncpa [#allocation3], 1 }
 0x1f8   :  { %691 = vsyncpa [#allocation3 + $0x1], 1 }
 0x1f9   :  { %692 = vsyncpa [#allocation6], 1 }
 0x1fa   :  { %693 = vsyncpa [#allocation4], 1 }
 0x1fb   :  { %695 = vsyncpa [#allocation4 + $0x1], 1 }

</bundles_post_ra>
